<compile_context>
chip_gen: v6e
topology: v6e:2x2x1
jax: 0.10.0
libtpu: 0.0.40
codegen_flags: <defaults>
</compile_context>

<pallas_src>
import functools

import jax
import jax.numpy as jnp
from jax.experimental import pallas as pl
from jax.experimental.pallas import tpu as pltpu

D_MODEL = 512          # the module hard-codes a 512-long frequency mask
N_ONES = 128           # first 128 entries of the mask are 1.0, rest 0.0


def emb_kernel(x_ref, b_ref, o_ref):
    # x_ref / o_ref: (tb, tn, L) tile;  b_ref: (1, tn, L) bias tile broadcast
    # over the batch rows.  One contiguous add + unmasked full-vreg stores.
    o_ref[...] = x_ref[...] + b_ref[...]


def _choose_tiling(B, N, lanes, itemsize,
                   target_block_bytes, min_block_bytes, max_block_bytes):
    """Pick (tb, tn): blocks near target_block_bytes, >= 4 balanced grid steps
    when the tensor allows (keeps both v7x TensorCores streaming, hides the
    pipeline prologue/epilogue), and no block above max_block_bytes (v7x's
    64 MiB VMEM budget)."""
    row_bytes = max(1, N * lanes * itemsize)       # one batch row at tn == N
    total_bytes = B * row_bytes

    # --- split over the batch axis ---------------------------------------
    steps_b = max(1, min(B, total_bytes // max(1, target_block_bytes)))
    for want in (4, 2):
        if steps_b >= want:
            break
        if B >= want and total_bytes // want >= min_block_bytes:
            steps_b = want
            break
    tb = max(1, pl.cdiv(B, steps_b))
    steps_b = pl.cdiv(B, tb)

    # --- split over the variate (N) axis ----------------------------------
    tn = N
    block_bytes = tb * row_bytes
    want_n = 1
    if block_bytes > max_block_bytes:                     # too big for VMEM
        want_n = pl.cdiv(block_bytes, target_block_bytes)
    if steps_b < 4 and N > 8 and total_bytes // (steps_b * 4) >= min_block_bytes:
        want_n = max(want_n, pl.cdiv(4, steps_b))         # more parallel steps
    if want_n > 1 and N > 8:
        tn = min(N, max(8, ((pl.cdiv(N, want_n) + 7) // 8) * 8))
    return tb, tn


def emb_apply(x3, bias, *, alias=False,
              min_pallas_bytes=1 << 20,
              target_block_bytes=(3 << 20) // 2,    # ~1.5 MiB blocks
              min_block_bytes=512 << 10,
              max_block_bytes=4 << 20):
    """Fused  out = x3 + bias  with the bias broadcast over the batch axis.

    x3  : (B, N, D)
    bias: (1, N, L).  L == D on the ordinary path.  With alias=True, L may be
          a 128-multiple prefix of D: the output aliases x3
          (input_output_aliases={0: 0}) and only lanes [0, L) are read/written
          (~4x less HBM traffic).  Donate x3 (jit donate_argnums) to make the
          aliasing truly in-place; without donation XLA copy-protects.
    """
    B, N, D = x3.shape
    assert bias.ndim == 3 and bias.shape[0] == 1 and bias.shape[1] == N
    L = bias.shape[2]
    if alias:
        assert L == D or (L < D and L % 128 == 0 and D % 128 == 0), \
            "aliased path needs a 128-aligned bias prefix"
    else:
        assert L == D, "non-aliased path needs a full-width (zero-padded) bias"
    bias = bias.astype(x3.dtype)

    nbytes = x3.size * x3.dtype.itemsize
    if nbytes < min_pallas_bytes:
        # Tiny tensors: a fused XLA elementwise op beats the fixed
        # pallas_call / DMA-descriptor / pipeline-prologue cost.
        return x3.at[..., :L].add(bias)

    itemsize = x3.dtype.itemsize
    tb, tn = _choose_tiling(B, N, L, itemsize,
                            target_block_bytes, min_block_bytes,
                            max_block_bytes)
    gb, gn = pl.cdiv(B, tb), pl.cdiv(N, tn)

    # Explicit scoped-VMEM budget: double-buffered x-in + out + bias blocks,
    # with 2x headroom.  v5e defaults to 16 MiB scoped VMEM; v7x has 64 MiB
    # physical, so cap well below that.
    blk_bytes = tb * tn * L * itemsize
    bias_bytes = tn * L * itemsize
    live = 2 * (2 * blk_bytes + bias_bytes)
    vmem_limit = int(min(48 << 20, max(16 << 20, 2 * live)))

    # Grid order: n outer, b inner -> the bias block index only changes on the
    # outer axis, so its DMA is skipped across all inner (batch) steps.
    return pl.pallas_call(
        emb_kernel,
        out_shape=jax.ShapeDtypeStruct((B, N, D), x3.dtype),
        grid=(gn, gb),
        in_specs=[
            pl.BlockSpec((tb, tn, L), lambda n, b: (b, n, 0)),   # x tile
            pl.BlockSpec((1, tn, L), lambda n, b: (0, n, 0)),    # bias tile
        ],
        out_specs=pl.BlockSpec((tb, tn, L), lambda n, b: (b, n, 0)),
        input_output_aliases=({0: 0} if alias else {}),
        compiler_params=pltpu.CompilerParams(
            dimension_semantics=("parallel", "parallel"),
            vmem_limit_bytes=vmem_limit),
    )(x3, bias)


def emb_forward(x, param, weights, *, donate=False, **kwargs):
    """out = x + 0.2 * param * weights   (forward of the PyTorch `Emb` module).

    x: [B, N, D] or [N, D]; param: [1, N, D]; weights: [1, 1, D].
    donate=True enables the aliased 128-lane path when the trailing lanes of
    `weights` are verifiably zero (caller should donate x for the speedup).
    """
    if x.ndim not in (2, 3):
        raise ValueError("The input shape is not supported.")
    squeeze = x.ndim == 2
    x3 = x[None] if squeeze else x
    _, _, D = x3.shape
    bias_full = (0.2 * param * weights).astype(x3.dtype)      # (1, N, D)

    bias, alias = bias_full, False
    if donate and D > N_ONES and D % 128 == 0:
        try:
            tail_zero = bool(jnp.all(weights[..., N_ONES:] == 0.0))
        except jax.errors.ConcretizationTypeError:
            tail_zero = False          # traced weights -> stay on safe path
        if tail_zero:
            bias, alias = bias_full[:, :, :N_ONES], True

    out3 = emb_apply(x3, bias, alias=alias, **kwargs)
    return out3[0] if squeeze else out3


class Emb:
    """JAX/Pallas counterpart of the PyTorch `Emb` module (glue in plain JAX)."""

    def __init__(self, d_model, indicating_dict, key=None):
        assert d_model == D_MODEL, "weights buffer is hard-coded to length 512"
        mask = jnp.concatenate([jnp.ones((N_ONES,), jnp.float32),
                                jnp.zeros((D_MODEL - N_ONES,), jnp.float32)])
        self.weights = mask[None, None, :]                    # [1, 1, 512]
        self.idx_indicating_dict = {}
        self.embed_list = []
        self.bias_full = []   # cached 0.2*param*mask, (1, n, 512)
        self.bias_nz = []     # nonzero lanes only,     (1, n, 128)
        for i, (label, n_vars) in enumerate(indicating_dict.items()):
            self.idx_indicating_dict[label] = i
            if key is None:
                p = jnp.zeros((1, n_vars, d_model), jnp.float32)   # PyTorch init
            else:
                key, sub = jax.random.split(key)
                # small random init so the kernel math is actually exercised
                p = 0.01 * jax.random.normal(sub, (1, n_vars, d_model), jnp.float32)
            self.embed_list.append(p)
            bf = 0.2 * p * self.weights          # precomputed once per label
            self.bias_full.append(bf)
            self.bias_nz.append(bf[:, :, :N_ONES])

    def __call__(self, x, x_label, *, donate=False, **kwargs):
        assert x_label in self.idx_indicating_dict
        idx = self.idx_indicating_dict[x_label]
        if x.ndim == 3:
            squeeze = False
        elif x.ndim == 2:
            squeeze = True
        else:
            raise ValueError("The input shape is not supported.")
        x3 = x[None] if squeeze else x
        bias = self.bias_nz[idx] if donate else self.bias_full[idx]
        out3 = emb_apply(x3, bias.astype(x3.dtype), alias=donate, **kwargs)
        return out3[0] if squeeze else out3


if __name__ == "__main__":
    key = jax.random.PRNGKey(0)
    k_param, k_big, k_rag, k_2d, k_alias, k_wide = jax.random.split(key, 6)

    indicating_dict = {"ds_a": 4, "ds_b": 6, "ds_c": 16, "ds_wide": 2000}
    model = Emb(D_MODEL, indicating_dict, k_param)

    def ref(x, label):
        i = model.idx_indicating_dict[label]
        if x.ndim == 3:
            return x + 0.2 * model.embed_list[i] * model.weights
        return x + 0.2 * model.embed_list[i][0] * model.weights[0]

    # 1) 3-D path through the Pallas kernel (batch-tiled grid).
    x_big = jax.random.normal(k_big, (8, 16, D_MODEL), jnp.float32)
    out_big = model(x_big, "ds_c", min_pallas_bytes=0)
    jax.block_until_ready(out_big)
    assert out_big.shape == x_big.shape
    assert jnp.allclose(out_big, ref(x_big, "ds_c"), atol=1e-6, rtol=1e-6)

    # 2) Ragged batch (B not divisible by tb -> partial leading block).
    x_rag = jax.random.normal(k_rag, (5, 4, D_MODEL), jnp.float32)
    out_rag = model(x_rag, "ds_a", min_pallas_bytes=0,
                    target_block_bytes=16 * 1024, min_block_bytes=0)
    jax.block_until_ready(out_rag)
    assert jnp.allclose(out_rag, ref(x_rag, "ds_a"), atol=1e-6, rtol=1e-6)

    # 3) 2-D path: default (XLA fallback for tiny tensors) and forced kernel.
    x2 = jax.random.normal(k_2d, (6, D_MODEL), jnp.float32)
    out2 = model(x2, "ds_b")
    out2k = model(x2, "ds_b", min_pallas_bytes=0)
    jax.block_until_ready((out2, out2k))
    assert out2.shape == (6, D_MODEL)
    assert jnp.allclose(out2, ref(x2, "ds_b"), atol=1e-6, rtol=1e-6)
    assert jnp.allclose(out2k, ref(x2, "ds_b"), atol=1e-6, rtol=1e-6)

    # 4) Wide-N input: exercises the N-tiling path (grid split along N with a
    #    ragged last N block), used to respect v7x's VMEM budget and to keep
    #    >= 4 parallel grid steps even at B == 1.
    x_wide = jax.random.normal(k_wide, (1, 2000, D_MODEL), jnp.float32)
    out_wide = model(x_wide, "ds_wide")            # large enough -> Pallas path
    jax.block_until_ready(out_wide)
    assert jnp.allclose(out_wide, ref(x_wide, "ds_wide"), atol=1e-6, rtol=1e-6)

    # 5) Donated / aliased fast path: output aliases x, only the 128 nonzero
    #    mask lanes are read & written (~4x less HBM traffic).  Reference is
    #    computed BEFORE donation; x_alias is not used after the call.
    x_alias = jax.random.normal(k_alias, (8, 16, D_MODEL), jnp.float32)
    ref_alias = jax.block_until_ready(ref(x_alias, "ds_c"))
    idx_c = model.idx_indicating_dict["ds_c"]
    bias_nz_c = model.bias_nz[idx_c]

    @functools.partial(jax.jit, donate_argnums=(0,))
    def donated(x, bias):
        return emb_apply(x, bias, alias=True, min_pallas_bytes=0)

    out_alias = donated(x_alias, bias_nz_c)
    jax.block_until_ready(out_alias)
    assert jnp.allclose(out_alias, ref_alias, atol=1e-6, rtol=1e-6)

    # 6) emb_forward convenience entry (mask-structure check + aliased path,
    #    eager: non-donated input is copy-protected by XLA, still correct).
    out_fwd = emb_forward(x_big, model.embed_list[idx_c], model.weights,
                          donate=True, min_pallas_bytes=0)
    jax.block_until_ready(out_fwd)
    assert jnp.allclose(out_fwd, out_big, atol=1e-6, rtol=1e-6)

    print("KERNEL_OK")
</pallas_src>

<mosaic_0001>
module attributes {stable_mosaic.version = 11 : i64} {
  func.func @emb_kernel(%arg0: i32, %arg1: i32, %arg2: memref<8x16x512xf32, #tpu.memory_space<vmem>>, %arg3: memref<1x16x512xf32, #tpu.memory_space<vmem>>, %arg4: memref<8x16x512xf32, #tpu.memory_space<vmem>>) attributes {dimension_semantics = [#tpu.dimension_semantics<parallel>, #tpu.dimension_semantics<parallel>], iteration_bounds = array<i64: 1, 1>, scalar_prefetch = 0 : i64, scratch_operands = 0 : i64, tpu.core_type = #tpu.core_type<tc>, window_params = [{transform_indices = @transform_0, window_bounds = array<i64: 8, 16, 512>}, {transform_indices = @transform_1, window_bounds = array<i64: 1, 16, 512>}, {transform_indices = @transform_2, window_bounds = array<i64: 8, 16, 512>}]} {
    %c0 = arith.constant 0 : index
    %c0_0 = arith.constant 0 : index
    %c0_1 = arith.constant 0 : index
    %0 = vector.load %arg2[%c0, %c0_0, %c0_1] : memref<8x16x512xf32, #tpu.memory_space<vmem>>, vector<8x16x512xf32>
    %c0_2 = arith.constant 0 : index
    %c0_3 = arith.constant 0 : index
    %c0_4 = arith.constant 0 : index
    %1 = vector.load %arg3[%c0_2, %c0_3, %c0_4] : memref<1x16x512xf32, #tpu.memory_space<vmem>>, vector<1x16x512xf32>
    %2 = vector.broadcast %1 : vector<1x16x512xf32> to vector<8x16x512xf32>
    %3 = arith.addf %0, %2 : vector<8x16x512xf32>
    %c0_5 = arith.constant 0 : index
    %c0_6 = arith.constant 0 : index
    %c0_7 = arith.constant 0 : index
    %4 = vector.load %arg4[%c0_5, %c0_6, %c0_7] : memref<8x16x512xf32, #tpu.memory_space<vmem>>, vector<8x16x512xf32>
    tpu.vector_store %arg4[%c0_5, %c0_6, %c0_7], %3 {strides = array<i32>} : memref<8x16x512xf32, #tpu.memory_space<vmem>>, vector<8x16x512xf32>,
    return
  }
  func.func @transform_0(%arg0: i32, %arg1: i32) -> (i32, i32, i32) {
    %c0_i32 = arith.constant 0 : i32
    %c0_i32_0 = arith.constant 0 : i32
    return %arg1, %arg0, %c0_i32 : i32, i32, i32
  }
  func.func @transform_1(%arg0: i32, %arg1: i32) -> (i32, i32, i32) {
    %c0_i32 = arith.constant 0 : i32
    %c0_i32_0 = arith.constant 0 : i32
    %c0_i32_1 = arith.constant 0 : i32
    return %c0_i32, %arg0, %c0_i32_0 : i32, i32, i32
  }
  func.func @transform_2(%arg0: i32, %arg1: i32) -> (i32, i32, i32) {
    %c0_i32 = arith.constant 0 : i32
    %c0_i32_0 = arith.constant 0 : i32
    return %arg1, %arg0, %c0_i32 : i32, i32, i32
  }
}

</mosaic_0001>

<bundles_post_ra>
// kernel: tpu_custom_call.1
= control target key start
LH: loop header
LB: loop body
LE: loop exit
PB: predicated region body
PF: predicated region fallthrough
CT: control target
= control target key end

     0   :  { %7 = vsyncpa [#allocation3], 0  ;;  %s447_s0 = inlined_call_operand.hbm [shape: f32[8,16,512], index: 0, kind: input, shape index: {}]   ;;  %s448_s1 = inlined_call_operand.hbm [shape: f32[1,16,512], index: 1, kind: input, shape index: {}]   ;;  %s449_s2 = inlined_call_operand.hbm [shape: f32[8,16,512], index: 2, kind: output, shape index: {}]  }
   0x1   :  { %8 = vsyncpa [#allocation6], 0 }
   0x2   :  { %9 = vsyncpa [#allocation4], 0  ;;  %s329_s9 = smov [#allocation2]  }
   0x3   :  { %s15_s10 = sshll.u32 %s329_s9, 4  ;;  %s16_s10 = int_to_ptr.vmem [resolvable:$true] %s15_s10 }
   0x4   :  { %s271_s11 = scalar_lea.vmem %s16_s10, 8192  ;;  %p276_p1 = scmp.lt.s32.totalorder %s16_s10, %s16_s10 }
   0x5   :  { %p272_p0 = scmp.ne.s32.totalorder %s16_s10, %s271_s11  ;;  %p277_p2 = scmp.lt.s32.totalorder %s271_s11, %s271_s11 }
   0x7   :  { %p278_p3 = por %p277_p2, %p276_p1 }
   0x9   :  { %p279_p4 = pnand %p278_p3, %p272_p0 }
   0xb   :  { %282 = shalt.err (!%p279_p4)
}
   0xc   :  { %s330_s12 = smov 512   ;;  %s331_s13 = smov 32  }
   0xd   :  { %21 = dma.hbm_to_vmem [thread:$0]  %s447_s0, 8192, %s16_s10, [#allocation3], %s330_s12, %s330_s12, %s331_s13  }
   0xe   :  { %s332_s16 = smov [#allocation5]  }
   0xf   :  { %s27_s17 = sshll.u32 %s332_s16, 4  ;;  %s28_s17 = int_to_ptr.vmem [resolvable:$true] %s27_s17 }
  0x10   :  { %s291_s18 = scalar_lea.vmem %s28_s17, 1024  ;;  %p296_p6 = scmp.lt.s32.totalorder %s28_s17, %s28_s17 }
  0x11   :  { %p292_p5 = scmp.ne.s32.totalorder %s28_s17, %s291_s18  ;;  %p297_p7 = scmp.lt.s32.totalorder %s291_s18, %s291_s18 }
  0x13   :  { %p298_p8 = por %p297_p7, %p296_p6 }
  0x15   :  { %p299_p9 = pnand %p298_p8, %p292_p5 }
  0x17   :  { %302 = shalt.err (!%p299_p9)
}
  0x18   :  { %33 = dma.hbm_to_vmem [thread:$0]  %s448_s1, 1024, %s28_s17, [#allocation6], %s330_s12, %s330_s12, %s331_s13  }
  0x19   :  { %323 = dma.done.wait [#allocation3], 8192  }
  0x1a   :  { %324 = vsyncadd [#allocation3], 4294959104 }
  0x1b   :  { %325 = dma.done.wait [#allocation6], 1024  }
  0x1c   :  { %326 = vsyncadd [#allocation6], 4294966272  ;;  %v40_v0 = vld [vmem:[#allocation2] sm:$0xff]  ;;  %v41_v2 = vld [vmem:[#allocation2 + $0x8] sm:$0xff]  ;;  %s333_s0 = smov [#allocation7]  }
  0x1d   :  { %v361_v1 = vld [vmem:[#allocation5] sm:$0xff]  ;;  %v364_v4 = vld [vmem:[#allocation5 + $0x8] sm:$0xff]  ;;  %v42_v5 = vld [vmem:[#allocation2 + $0x10] sm:$0xff]  ;;  %s245_s1 = sshll.u32 %s333_s0, 4  ;;  %s246_s1 = int_to_ptr.vmem [resolvable:$true] %s245_s1 }
  0x1e   :  { %v112_v3 = vadd.f32 %v361_v1, %v40_v0  ;;  %v366_v6 = vld [vmem:[#allocation5 + $0x10] sm:$0xff]  ;;  %v113_v7 = vadd.f32 %v364_v4, %v41_v2  ;;  %v43_v9 = vld [vmem:[#allocation2 + $0x18] sm:$0xff]  ;;  %v44_v11 = vld [vmem:[#allocation2 + $0x20] sm:$0xff]  ;;  %s303_s21 = scalar_lea.vmem %s246_s1, 8192  ;;  %p308_p11 = scmp.lt.s32.totalorder %s246_s1, %s246_s1 }
  0x1f   :  { %v114_v8 = vadd.f32 %v366_v6, %v42_v5  ;;  %v370_v10 = vld [vmem:[#allocation5 + $0x18] sm:$0xff]  ;;  %v373_v13 = vld [vmem:[#allocation5 + $0x20] sm:$0xff]  ;;  %v45_v14 = vld [vmem:[#allocation2 + $0x28] sm:$0xff]  ;;  %p304_p10 = scmp.ne.s32.totalorder %s246_s1, %s303_s21  ;;  %p309_p12 = scmp.lt.s32.totalorder %s303_s21, %s303_s21 }
  0x20   :  { %176 = vst [vmem:[#allocation7] sm:$0xff] %v112_v3  ;;  %v115_v12 = vadd.f32 %v370_v10, %v43_v9  ;;  %v375_v15 = vld [vmem:[#allocation5 + $0x28] sm:$0xff]  ;;  %177 = vst [vmem:[#allocation7 + $0x8] sm:$0xff] %v113_v7  ;;  %v116_v16 = vadd.f32 %v373_v13, %v44_v11  ;;  %v46_v18 = vld [vmem:[#allocation2 + $0x30] sm:$0xff] }
  0x21   :  { %178 = vst [vmem:[#allocation7 + $0x10] sm:$0xff] %v114_v8  ;;  %v117_v17 = vadd.f32 %v375_v15, %v45_v14  ;;  %v379_v19 = vld [vmem:[#allocation5 + $0x30] sm:$0xff]  ;;  %v47_v20 = vld [vmem:[#allocation2 + $0x38] sm:$0xff]  ;;  %v48_v23 = vld [vmem:[#allocation2 + $0x40] sm:$0xff]  ;;  %p310_p13 = por %p309_p12, %p308_p11 }
  0x22   :  { %179 = vst [vmem:[#allocation7 + $0x18] sm:$0xff] %v115_v12  ;;  %v118_v21 = vadd.f32 %v379_v19, %v46_v18  ;;  %v382_v22 = vld [vmem:[#allocation5 + $0x38] sm:$0xff]  ;;  %v49_v24 = vld [vmem:[#allocation2 + $0x48] sm:$0xff]  ;;  %180 = vst [vmem:[#allocation7 + $0x20] sm:$0xff] %v116_v16  ;;  %v120_v26 = vadd.f32 %v361_v1, %v48_v23 }
  0x23   :  { %181 = vst [vmem:[#allocation7 + $0x28] sm:$0xff] %v117_v17  ;;  %v119_v25 = vadd.f32 %v382_v22, %v47_v20  ;;  %v121_v27 = vadd.f32 %v364_v4, %v49_v24  ;;  %v50_v28 = vld [vmem:[#allocation2 + $0x50] sm:$0xff]  ;;  %v51_v29 = vld [vmem:[#allocation2 + $0x58] sm:$0xff]  ;;  %v52_v30 = vld [vmem:[#allocation2 + $0x60] sm:$0xff]  ;;  %p311_p0 = pnand %p310_p13, %p304_p10 }
  0x24   :  { %182 = vst [vmem:[#allocation7 + $0x30] sm:$0xff] %v118_v21  ;;  %v122_v31 = vadd.f32 %v366_v6, %v50_v28  ;;  %v123_v32 = vadd.f32 %v370_v10, %v51_v29  ;;  %v124_v33 = vadd.f32 %v373_v13, %v52_v30  ;;  %v53_v34 = vld [vmem:[#allocation2 + $0x68] sm:$0xff]  ;;  %v54_v35 = vld [vmem:[#allocation2 + $0x70] sm:$0xff]  ;;  %v55_v36 = vld [vmem:[#allocation2 + $0x78] sm:$0xff] }
  0x25   :  { %183 = vst [vmem:[#allocation7 + $0x38] sm:$0xff] %v119_v25  ;;  %184 = vst [vmem:[#allocation7 + $0x40] sm:$0xff] %v120_v26  ;;  %v125_v37 = vadd.f32 %v375_v15, %v53_v34  ;;  %v126_v38 = vadd.f32 %v379_v19, %v54_v35  ;;  %v127_v39 = vadd.f32 %v382_v22, %v55_v36  ;;  %v56_v40 = vld [vmem:[#allocation2 + $0x80] sm:$0xff]  ;;  %v57_v41 = vld [vmem:[#allocation2 + $0x88] sm:$0xff] }
  0x26   :  { %185 = vst [vmem:[#allocation7 + $0x48] sm:$0xff] %v121_v27  ;;  %v58_v42 = vld [vmem:[#allocation2 + $0x90] sm:$0xff]  ;;  %186 = vst [vmem:[#allocation7 + $0x50] sm:$0xff] %v122_v31  ;;  %v128_v43 = vadd.f32 %v361_v1, %v56_v40  ;;  %v129_v44 = vadd.f32 %v364_v4, %v57_v41  ;;  %v59_v46 = vld [vmem:[#allocation2 + $0x98] sm:$0xff] }
  0x27   :  { %187 = vst [vmem:[#allocation7 + $0x58] sm:$0xff] %v123_v32  ;;  %188 = vst [vmem:[#allocation7 + $0x60] sm:$0xff] %v124_v33  ;;  %v130_v45 = vadd.f32 %v366_v6, %v58_v42  ;;  %v60_v47 = vld [vmem:[#allocation2 + $0xa0] sm:$0xff]  ;;  %v61_v48 = vld [vmem:[#allocation2 + $0xa8] sm:$0xff]  ;;  %v131_v49 = vadd.f32 %v370_v10, %v59_v46 }
  0x28   :  { %189 = vst [vmem:[#allocation7 + $0x68] sm:$0xff] %v125_v37  ;;  %190 = vst [vmem:[#allocation7 + $0x70] sm:$0xff] %v126_v38  ;;  %v132_v50 = vadd.f32 %v373_v13, %v60_v47  ;;  %v133_v51 = vadd.f32 %v375_v15, %v61_v48  ;;  %v62_v52 = vld [vmem:[#allocation2 + $0xb0] sm:$0xff]  ;;  %v63_v53 = vld [vmem:[#allocation2 + $0xb8] sm:$0xff] }
  0x29   :  { %191 = vst [vmem:[#allocation7 + $0x78] sm:$0xff] %v127_v39  ;;  %v64_v54 = vld [vmem:[#allocation2 + $0xc0] sm:$0xff]  ;;  %192 = vst [vmem:[#allocation7 + $0x80] sm:$0xff] %v128_v43  ;;  %v134_v55 = vadd.f32 %v379_v19, %v62_v52  ;;  %v135_v56 = vadd.f32 %v382_v22, %v63_v53  ;;  %v65_v58 = vld [vmem:[#allocation2 + $0xc8] sm:$0xff] }
  0x2a   :  { %193 = vst [vmem:[#allocation7 + $0x88] sm:$0xff] %v129_v44  ;;  %194 = vst [vmem:[#allocation7 + $0x90] sm:$0xff] %v130_v45  ;;  %v136_v57 = vadd.f32 %v361_v1, %v64_v54  ;;  %v66_v59 = vld [vmem:[#allocation2 + $0xd0] sm:$0xff]  ;;  %v67_v60 = vld [vmem:[#allocation2 + $0xd8] sm:$0xff]  ;;  %v137_v61 = vadd.f32 %v364_v4, %v65_v58 }
  0x2b   :  { %195 = vst [vmem:[#allocation7 + $0x98] sm:$0xff] %v131_v49  ;;  %196 = vst [vmem:[#allocation7 + $0xa0] sm:$0xff] %v132_v50  ;;  %v138_v62 = vadd.f32 %v366_v6, %v66_v59  ;;  %v139_v63 = vadd.f32 %v370_v10, %v67_v60  ;;  %v68_v0 = vld [vmem:[#allocation2 + $0xe0] sm:$0xff]  ;;  %v69_v2 = vld [vmem:[#allocation2 + $0xe8] sm:$0xff] }
  0x2c   :  { %197 = vst [vmem:[#allocation7 + $0xa8] sm:$0xff] %v133_v51  ;;  %v70_v3 = vld [vmem:[#allocation2 + $0xf0] sm:$0xff]  ;;  %198 = vst [vmem:[#allocation7 + $0xb0] sm:$0xff] %v134_v55  ;;  %v140_v5 = vadd.f32 %v373_v13, %v68_v0  ;;  %v141_v7 = vadd.f32 %v375_v15, %v69_v2  ;;  %v71_v9 = vld [vmem:[#allocation2 + $0xf8] sm:$0xff] }
  0x2d   :  { %199 = vst [vmem:[#allocation7 + $0xb8] sm:$0xff] %v135_v56  ;;  %200 = vst [vmem:[#allocation7 + $0xc0] sm:$0xff] %v136_v57  ;;  %v142_v8 = vadd.f32 %v379_v19, %v70_v3  ;;  %v72_v11 = vld [vmem:[#allocation2 + $0x100] sm:$0xff]  ;;  %v73_v12 = vld [vmem:[#allocation2 + $0x108] sm:$0xff]  ;;  %v143_v14 = vadd.f32 %v382_v22, %v71_v9 }
  0x2e   :  { %201 = vst [vmem:[#allocation7 + $0xc8] sm:$0xff] %v137_v61  ;;  %202 = vst [vmem:[#allocation7 + $0xd0] sm:$0xff] %v138_v62  ;;  %v144_v16 = vadd.f32 %v361_v1, %v72_v11  ;;  %v145_v17 = vadd.f32 %v364_v4, %v73_v12  ;;  %v74_v18 = vld [vmem:[#allocation2 + $0x110] sm:$0xff]  ;;  %v75_v20 = vld [vmem:[#allocation2 + $0x118] sm:$0xff] }
  0x2f   :  { %203 = vst [vmem:[#allocation7 + $0xd8] sm:$0xff] %v139_v63  ;;  %v76_v21 = vld [vmem:[#allocation2 + $0x120] sm:$0xff]  ;;  %204 = vst [vmem:[#allocation7 + $0xe0] sm:$0xff] %v140_v5  ;;  %v146_v23 = vadd.f32 %v366_v6, %v74_v18  ;;  %v147_v24 = vadd.f32 %v370_v10, %v75_v20  ;;  %v77_v26 = vld [vmem:[#allocation2 + $0x128] sm:$0xff] }
  0x30   :  { %205 = vst [vmem:[#allocation7 + $0xe8] sm:$0xff] %v141_v7  ;;  %206 = vst [vmem:[#allocation7 + $0xf0] sm:$0xff] %v142_v8  ;;  %v148_v25 = vadd.f32 %v373_v13, %v76_v21  ;;  %v78_v27 = vld [vmem:[#allocation2 + $0x130] sm:$0xff]  ;;  %v79_v28 = vld [vmem:[#allocation2 + $0x138] sm:$0xff]  ;;  %v149_v29 = vadd.f32 %v375_v15, %v77_v26 }
  0x31   :  { %207 = vst [vmem:[#allocation7 + $0xf8] sm:$0xff] %v143_v14  ;;  %208 = vst [vmem:[#allocation7 + $0x100] sm:$0xff] %v144_v16  ;;  %v150_v30 = vadd.f32 %v379_v19, %v78_v27  ;;  %v151_v31 = vadd.f32 %v382_v22, %v79_v28  ;;  %v80_v32 = vld [vmem:[#allocation2 + $0x140] sm:$0xff]  ;;  %v81_v33 = vld [vmem:[#allocation2 + $0x148] sm:$0xff] }
  0x32   :  { %209 = vst [vmem:[#allocation7 + $0x108] sm:$0xff] %v145_v17  ;;  %v82_v34 = vld [vmem:[#allocation2 + $0x150] sm:$0xff]  ;;  %210 = vst [vmem:[#allocation7 + $0x110] sm:$0xff] %v146_v23  ;;  %v152_v35 = vadd.f32 %v361_v1, %v80_v32  ;;  %v153_v36 = vadd.f32 %v364_v4, %v81_v33  ;;  %v83_v38 = vld [vmem:[#allocation2 + $0x158] sm:$0xff] }
  0x33   :  { %211 = vst [vmem:[#allocation7 + $0x118] sm:$0xff] %v147_v24  ;;  %212 = vst [vmem:[#allocation7 + $0x120] sm:$0xff] %v148_v25  ;;  %v154_v37 = vadd.f32 %v366_v6, %v82_v34  ;;  %v84_v39 = vld [vmem:[#allocation2 + $0x160] sm:$0xff]  ;;  %v85_v40 = vld [vmem:[#allocation2 + $0x168] sm:$0xff]  ;;  %v155_v41 = vadd.f32 %v370_v10, %v83_v38 }
  0x34   :  { %213 = vst [vmem:[#allocation7 + $0x128] sm:$0xff] %v149_v29  ;;  %214 = vst [vmem:[#allocation7 + $0x130] sm:$0xff] %v150_v30  ;;  %v156_v42 = vadd.f32 %v373_v13, %v84_v39  ;;  %v157_v43 = vadd.f32 %v375_v15, %v85_v40  ;;  %v86_v44 = vld [vmem:[#allocation2 + $0x170] sm:$0xff]  ;;  %v87_v45 = vld [vmem:[#allocation2 + $0x178] sm:$0xff] }
  0x35   :  { %215 = vst [vmem:[#allocation7 + $0x138] sm:$0xff] %v151_v31  ;;  %v88_v46 = vld [vmem:[#allocation2 + $0x180] sm:$0xff]  ;;  %216 = vst [vmem:[#allocation7 + $0x140] sm:$0xff] %v152_v35  ;;  %v158_v47 = vadd.f32 %v379_v19, %v86_v44  ;;  %v159_v48 = vadd.f32 %v382_v22, %v87_v45  ;;  %v89_v50 = vld [vmem:[#allocation2 + $0x188] sm:$0xff] }
  0x36   :  { %217 = vst [vmem:[#allocation7 + $0x148] sm:$0xff] %v153_v36  ;;  %218 = vst [vmem:[#allocation7 + $0x150] sm:$0xff] %v154_v37  ;;  %v160_v49 = vadd.f32 %v361_v1, %v88_v46  ;;  %v90_v51 = vld [vmem:[#allocation2 + $0x190] sm:$0xff]  ;;  %v91_v52 = vld [vmem:[#allocation2 + $0x198] sm:$0xff]  ;;  %v161_v53 = vadd.f32 %v364_v4, %v89_v50 }
  0x37   :  { %219 = vst [vmem:[#allocation7 + $0x158] sm:$0xff] %v155_v41  ;;  %220 = vst [vmem:[#allocation7 + $0x160] sm:$0xff] %v156_v42  ;;  %v162_v54 = vadd.f32 %v366_v6, %v90_v51  ;;  %v163_v55 = vadd.f32 %v370_v10, %v91_v52  ;;  %v92_v56 = vld [vmem:[#allocation2 + $0x1a0] sm:$0xff]  ;;  %v93_v57 = vld [vmem:[#allocation2 + $0x1a8] sm:$0xff] }
  0x38   :  { %221 = vst [vmem:[#allocation7 + $0x168] sm:$0xff] %v157_v43  ;;  %v94_v58 = vld [vmem:[#allocation2 + $0x1b0] sm:$0xff]  ;;  %222 = vst [vmem:[#allocation7 + $0x170] sm:$0xff] %v158_v47  ;;  %v164_v59 = vadd.f32 %v373_v13, %v92_v56  ;;  %v165_v60 = vadd.f32 %v375_v15, %v93_v57  ;;  %v95_v62 = vld [vmem:[#allocation2 + $0x1b8] sm:$0xff] }
  0x39   :  { %223 = vst [vmem:[#allocation7 + $0x178] sm:$0xff] %v159_v48  ;;  %224 = vst [vmem:[#allocation7 + $0x180] sm:$0xff] %v160_v49  ;;  %v166_v61 = vadd.f32 %v379_v19, %v94_v58  ;;  %v96_v63 = vld [vmem:[#allocation2 + $0x1c0] sm:$0xff]  ;;  %v97_v0 = vld [vmem:[#allocation2 + $0x1c8] sm:$0xff]  ;;  %v167_v2 = vadd.f32 %v382_v22, %v95_v62 }
  0x3a   :  { %225 = vst [vmem:[#allocation7 + $0x188] sm:$0xff] %v161_v53  ;;  %226 = vst [vmem:[#allocation7 + $0x190] sm:$0xff] %v162_v54  ;;  %v168_v3 = vadd.f32 %v361_v1, %v96_v63  ;;  %v169_v5 = vadd.f32 %v364_v4, %v97_v0  ;;  %v98_v7 = vld [vmem:[#allocation2 + $0x1d0] sm:$0xff]  ;;  %v99_v8 = vld [vmem:[#allocation2 + $0x1d8] sm:$0xff] }
  0x3b   :  { %227 = vst [vmem:[#allocation7 + $0x198] sm:$0xff] %v163_v55  ;;  %v100_v9 = vld [vmem:[#allocation2 + $0x1e0] sm:$0xff]  ;;  %228 = vst [vmem:[#allocation7 + $0x1a0] sm:$0xff] %v164_v59  ;;  %v170_v11 = vadd.f32 %v366_v6, %v98_v7  ;;  %v171_v12 = vadd.f32 %v370_v10, %v99_v8  ;;  %v101_v16 = vld [vmem:[#allocation2 + $0x1e8] sm:$0xff] }
  0x3c   :  { %229 = vst [vmem:[#allocation7 + $0x1a8] sm:$0xff] %v165_v60  ;;  %230 = vst [vmem:[#allocation7 + $0x1b0] sm:$0xff] %v166_v61  ;;  %v172_v14 = vadd.f32 %v373_v13, %v100_v9  ;;  %v102_v17 = vld [vmem:[#allocation2 + $0x1f0] sm:$0xff]  ;;  %v103_v18 = vld [vmem:[#allocation2 + $0x1f8] sm:$0xff]  ;;  %v173_v1 = vadd.f32 %v375_v15, %v101_v16 }
  0x3d   :  { %231 = vst [vmem:[#allocation7 + $0x1b8] sm:$0xff] %v167_v2  ;;  %232 = vst [vmem:[#allocation7 + $0x1c0] sm:$0xff] %v168_v3  ;;  %v174_v4 = vadd.f32 %v379_v19, %v102_v17  ;;  %v175_v20 = vadd.f32 %v382_v22, %v103_v18 }
  0x3e   :  { %233 = vst [vmem:[#allocation7 + $0x1c8] sm:$0xff] %v169_v5  ;;  %234 = vst [vmem:[#allocation7 + $0x1d0] sm:$0xff] %v170_v11 }
  0x3f   :  { %235 = vst [vmem:[#allocation7 + $0x1d8] sm:$0xff] %v171_v12  ;;  %236 = vst [vmem:[#allocation7 + $0x1e0] sm:$0xff] %v172_v14 }
  0x40   :  { %237 = vst [vmem:[#allocation7 + $0x1e8] sm:$0xff] %v173_v1  ;;  %238 = vst [vmem:[#allocation7 + $0x1f0] sm:$0xff] %v174_v4 }
  0x41   :  { %239 = vst [vmem:[#allocation7 + $0x1f8] sm:$0xff] %v175_v20 }
  0x42   :  { %314 = shalt.err (!%p311_p0)
}
  0x43   :  { %251 = dma.vmem_to_hbm [thread:$0]  %s246_s1, 8192, %s449_s2, [#allocation4], %s330_s12, %s330_s12, %s331_s13  }
  0x44   :  { %327 = dma.done.wait [#allocation4], 8192  }
  0x45   :  { %328 = vsyncadd [#allocation4], 4294959104 }
  0x46   :  { %255 = vsyncpa [#allocation3], 1 }
  0x47   :  { %256 = vsyncpa [#allocation6], 1 }
  0x48   :  { %257 = vsyncpa [#allocation4], 1 }

</bundles_post_ra>
